<compile_context>
chip_gen: v7x
topology: tpu7x:2x2x1
jax: 0.10.0
libtpu: 0.0.40
codegen_flags: <defaults>
</compile_context>

<pallas_src>
import jax
import jax.numpy as jnp
from jax.experimental import pallas as pl
from jax.experimental.pallas import tpu as pltpu


def _round_up(x, m):
    return (x + m - 1) // m * m


def _disc_kernel(x_ref, w1_ref, b1_ref, w2_ref, b2_ref, w3_ref, b3_ref, o_ref):
    # x tile: (TM, D) f32 (or bf16 if the wrapper had to pad the feature dim).
    # Cast to bf16 on the VPU right before the MXU -- no extra HBM pass.
    x = x_ref[...].astype(jnp.bfloat16)

    # Linear(D, 512): bf16 MXU, f32 accumulation.
    h1 = jnp.dot(x, w1_ref[...], preferred_element_type=jnp.float32) + b1_ref[...]
    # LeakyReLU(0.2) on the (TM, 512) intermediate in bf16 (it is cast to bf16
    # for the next matmul anyway; halves VPU element traffic / vreg pressure).
    h1 = h1.astype(jnp.bfloat16)
    h1 = jnp.maximum(h1, 0.2 * h1)

    # Linear(512, 256) + LeakyReLU(0.2); epilogue stays in f32.
    h2 = jnp.dot(h1, w2_ref[...], preferred_element_type=jnp.float32) + b2_ref[...]
    h2 = jnp.maximum(h2, 0.2 * h2)

    # Linear(256, 1) + Sigmoid as a VPU mul + XLU cross-lane reduction.
    logit = jnp.sum(h2 * w3_ref[...], axis=-1, keepdims=True) + b3_ref[...]
    # Numerically stable sigmoid: never exponentiates a positive argument,
    # exact division (tiny (TM,1) column, nowhere near the critical path).
    e = jnp.exp(-jnp.abs(logit))
    o_ref[...] = jnp.where(logit >= 0, 1.0 / (1.0 + e), e / (1.0 + e))


def init_params(key, in_dim):
    """Deterministic synthetic params matching nn.Linear init/shapes.
    Stored transposed (in_features, out_features) for row-major matmul."""
    ks = jax.random.split(key, 6)

    def linear(kw, kb, fan_in, fan_out):
        bound = 1.0 / jnp.sqrt(fan_in)
        w = jax.random.uniform(kw, (fan_in, fan_out), jnp.float32, -bound, bound)
        b = jax.random.uniform(kb, (1, fan_out), jnp.float32, -bound, bound)
        return w, b

    w1, b1 = linear(ks[0], ks[1], in_dim, 512)
    w2, b2 = linear(ks[2], ks[3], 512, 256)
    w3, b3 = linear(ks[4], ks[5], 256, 1)
    return (w1, b1, w2, b2, w3, b3)


def prepare_params(params):
    """One-time kernel-side parameter prep (do NOT repeat per forward call):
    bf16 MXU weights, feature dim of w1 zero-padded to a multiple of 128,
    f32 row-vector biases / final-layer row."""
    w1, b1, w2, b2, w3, b3 = params
    D0 = w1.shape[0]
    D = _round_up(D0, 128)
    w1p = jnp.pad(w1, ((0, D - D0), (0, 0))) if D != D0 else w1
    return {
        "d0": D0,
        "d": D,
        "w1": w1p.astype(jnp.bfloat16),
        "b1": b1.astype(jnp.float32).reshape(1, -1),
        "w2": w2.astype(jnp.bfloat16),
        "b2": b2.astype(jnp.float32).reshape(1, -1),
        "w3": w3.T.astype(jnp.float32).reshape(1, -1),   # (1, 256)
        "b3": b3.astype(jnp.float32).reshape(1, 1),
    }


def discriminator_forward(img, prep, *, tm_max=512):
    """img: (B, C, H, W) float32. Returns validity (B, 1) float32."""
    B = img.shape[0]
    D0, D = prep["d0"], prep["d"]
    x = img.reshape(B, -1)  # same flattening as torch .view(B, -1)
    assert x.shape[1] == D0, (x.shape, D0)

    if D != D0:
        # Pad + cast in ONE fused bf16 pass (zero cols x zero w1 rows -> no
        # effect on the result).
        x = jnp.pad(x, ((0, 0), (0, D - D0))).astype(jnp.bfloat16)
    # else: keep x in f32; the kernel casts to bf16 on the VPU.

    # Batch tile: multiple of 16 (bf16 sublane packing), big enough to
    # amortize the ~0.35 us/grid-step overhead, and >= 2 grid steps when the
    # batch allows so both v7x TensorCores get work ("parallel" axis).
    Bp16 = _round_up(B, 16)
    if Bp16 <= 32:
        TM = Bp16
    else:
        TM = min(tm_max, _round_up(pl.cdiv(Bp16, 2), 16))
    # Keep each (double-buffered) x tile comfortably inside VMEM at large D.
    tm_cap = max(16, ((8 * 1024 * 1024) // max(D * x.dtype.itemsize, 1)) // 16 * 16)
    TM = min(TM, tm_cap)

    Bp = _round_up(B, TM)
    if Bp != B:
        x = jnp.pad(x, ((0, Bp - B), (0, 0)))

    H1 = prep["w1"].shape[1]
    H2 = prep["w2"].shape[1]
    grid = (Bp // TM,)

    resident = lambda shape: pl.BlockSpec(shape, lambda i: (0, 0))

    x_bytes = Bp * D * x.dtype.itemsize
    w_bytes = (D * H1 + H1 * H2) * 2 + (H1 + H2 + H2 + 1) * 4
    cost = pl.CostEstimate(
        flops=2 * Bp * (D * H1 + H1 * H2 + H2),
        transcendentals=Bp,
        bytes_accessed=x_bytes + w_bytes + Bp * 4,
    )

    out = pl.pallas_call(
        _disc_kernel,
        out_shape=jax.ShapeDtypeStruct((Bp, 1), jnp.float32),
        grid=grid,
        in_specs=[
            pl.BlockSpec((TM, D), lambda i: (i, 0)),   # x tile (pipelined)
            resident((D, H1)),                         # w1 (stays in VMEM)
            resident((1, H1)),                         # b1
            resident((H1, H2)),                        # w2
            resident((1, H2)),                         # b2
            resident((1, H2)),                         # w3 row
            resident((1, 1)),                          # b3
        ],
        out_specs=pl.BlockSpec((TM, 1), lambda i: (i, 0)),
        compiler_params=pltpu.CompilerParams(
            dimension_semantics=("parallel",),
            vmem_limit_bytes=32 * 1024 * 1024,  # leaves headroom on v7x (64 MiB phys)
        ),
        cost_estimate=cost,
    )(x, prep["w1"], prep["b1"], prep["w2"], prep["b2"], prep["w3"], prep["b3"])

    return out[:B] if Bp != B else out


def _reference_forward(img, params):
    w1, b1, w2, b2, w3, b3 = params
    x = img.reshape(img.shape[0], -1)
    h1 = x @ w1 + b1
    h1 = jnp.where(h1 > 0, h1, 0.2 * h1)
    h2 = h1 @ w2 + b2
    h2 = jnp.where(h2 > 0, h2, 0.2 * h2)
    return jax.nn.sigmoid(h2 @ w3 + b3)


if __name__ == "__main__":
    key = jax.random.PRNGKey(0)
    k_img, k_par = jax.random.split(key)

    # Small shapes consistent with the module: channels=1, img_size=16 -> D=256
    B, C, H, W = 8, 1, 16, 16
    img = jax.random.normal(k_img, (B, C, H, W), dtype=jnp.float32)
    params = init_params(k_par, C * H * W)
    prep = prepare_params(params)          # one-time: bf16 weights, padded w1

    validity = discriminator_forward(img, prep)
    validity = jax.block_until_ready(validity)

    ref = _reference_forward(img, params)
    assert validity.shape == (B, 1)
    # bf16 matmul inputs / bf16 LeakyReLU -> loosened tolerance vs f32 reference.
    assert jnp.allclose(validity, ref, atol=3e-2, rtol=3e-2), (
        float(jnp.max(jnp.abs(validity - ref))))

    print("KERNEL_OK")
</pallas_src>

<mosaic_0001>
module attributes {stable_mosaic.version = 11 : i64} {
  func.func @_disc_kernel(%arg0: i32, %arg1: memref<16x256xf32, #tpu.memory_space<vmem>>, %arg2: memref<256x512xbf16, #tpu.memory_space<vmem>>, %arg3: memref<1x512xf32, #tpu.memory_space<vmem>>, %arg4: memref<512x256xbf16, #tpu.memory_space<vmem>>, %arg5: memref<1x256xf32, #tpu.memory_space<vmem>>, %arg6: memref<1x256xf32, #tpu.memory_space<vmem>>, %arg7: memref<1x1xf32, #tpu.memory_space<vmem>>, %arg8: memref<16x1xf32, #tpu.memory_space<vmem>>) attributes {dimension_semantics = [#tpu.dimension_semantics<parallel>], iteration_bounds = array<i64: 1>, scalar_prefetch = 0 : i64, scratch_operands = 0 : i64, tpu.core_type = #tpu.core_type<tc>, window_params = [{transform_indices = @transform_0, window_bounds = array<i64: 16, 256>}, {pipeline_mode = #tpu.pipeline_mode<synchronous>, transform_indices = @transform_1, window_bounds = array<i64: 256, 512>}, {pipeline_mode = #tpu.pipeline_mode<synchronous>, transform_indices = @transform_2, window_bounds = array<i64: 1, 512>}, {pipeline_mode = #tpu.pipeline_mode<synchronous>, transform_indices = @transform_3, window_bounds = array<i64: 512, 256>}, {pipeline_mode = #tpu.pipeline_mode<synchronous>, transform_indices = @transform_4, window_bounds = array<i64: 1, 256>}, {pipeline_mode = #tpu.pipeline_mode<synchronous>, transform_indices = @transform_5, window_bounds = array<i64: 1, 256>}, {pipeline_mode = #tpu.pipeline_mode<synchronous>, transform_indices = @transform_6, window_bounds = array<i64: 1, 1>}, {transform_indices = @transform_7, window_bounds = array<i64: 16, 1>}]} {
    %c0 = arith.constant 0 : index
    %c0_0 = arith.constant 0 : index
    %0 = vector.load %arg1[%c0, %c0_0] : memref<16x256xf32, #tpu.memory_space<vmem>>, vector<16x256xf32>
    %1 = arith.truncf %0 : vector<16x256xf32> to vector<16x256xbf16>
    %c0_1 = arith.constant 0 : index
    %c0_2 = arith.constant 0 : index
    %2 = vector.load %arg2[%c0_1, %c0_2] : memref<256x512xbf16, #tpu.memory_space<vmem>>, vector<256x512xbf16>
    %cst = arith.constant dense<0.000000e+00> : vector<16x512xf32>
    %3 = tpu.matmul %1, %2, %cst {dimension_numbers = #tpu.dot_dimension_numbers<[1], [0], [0], [1], [0, 0, 1, 1], [], []>} : vector<16x256xbf16>, vector<256x512xbf16>, vector<16x512xf32> -> vector<16x512xf32>
    %c0_3 = arith.constant 0 : index
    %c0_4 = arith.constant 0 : index
    %4 = vector.load %arg3[%c0_3, %c0_4] : memref<1x512xf32, #tpu.memory_space<vmem>>, vector<1x512xf32>
    %5 = vector.broadcast %4 : vector<1x512xf32> to vector<16x512xf32>
    %6 = arith.addf %3, %5 : vector<16x512xf32>
    %7 = arith.truncf %6 : vector<16x512xf32> to vector<16x512xbf16>
    %cst_5 = arith.constant 2.001950e-01 : bf16
    %8 = vector.broadcast %cst_5 : bf16 to vector<16x512xbf16>
    %9 = arith.mulf %8, %7 : vector<16x512xbf16>
    %10 = arith.maximumf %7, %9 : vector<16x512xbf16>
    %c0_6 = arith.constant 0 : index
    %c0_7 = arith.constant 0 : index
    %11 = vector.load %arg4[%c0_6, %c0_7] : memref<512x256xbf16, #tpu.memory_space<vmem>>, vector<512x256xbf16>
    %cst_8 = arith.constant dense<0.000000e+00> : vector<16x256xf32>
    %12 = tpu.matmul %10, %11, %cst_8 {dimension_numbers = #tpu.dot_dimension_numbers<[1], [0], [0], [1], [0, 0, 1, 1], [], []>} : vector<16x512xbf16>, vector<512x256xbf16>, vector<16x256xf32> -> vector<16x256xf32>
    %c0_9 = arith.constant 0 : index
    %c0_10 = arith.constant 0 : index
    %13 = vector.load %arg5[%c0_9, %c0_10] : memref<1x256xf32, #tpu.memory_space<vmem>>, vector<1x256xf32>
    %14 = vector.broadcast %13 : vector<1x256xf32> to vector<16x256xf32>
    %15 = arith.addf %12, %14 : vector<16x256xf32>
    %cst_11 = arith.constant 2.000000e-01 : f32
    %16 = vector.broadcast %cst_11 : f32 to vector<16x256xf32>
    %17 = arith.mulf %16, %15 : vector<16x256xf32>
    %18 = arith.maximumf %15, %17 : vector<16x256xf32>
    %c0_12 = arith.constant 0 : index
    %c0_13 = arith.constant 0 : index
    %19 = vector.load %arg6[%c0_12, %c0_13] : memref<1x256xf32, #tpu.memory_space<vmem>>, vector<1x256xf32>
    %20 = vector.broadcast %19 : vector<1x256xf32> to vector<16x256xf32>
    %21 = arith.mulf %18, %20 : vector<16x256xf32>
    %cst_14 = arith.constant dense<0.000000e+00> : vector<16xf32>
    %22 = vector.multi_reduction <add>, %21, %cst_14 [1] : vector<16x256xf32> to vector<16xf32>
    %23 = vector.shape_cast %22 : vector<16xf32> to vector<16x1xf32>
    %c0_15 = arith.constant 0 : index
    %c0_16 = arith.constant 0 : index
    %24 = vector.load %arg7[%c0_15, %c0_16] : memref<1x1xf32, #tpu.memory_space<vmem>>, vector<1x1xf32>
    %25 = vector.broadcast %24 : vector<1x1xf32> to vector<16x1xf32>
    %26 = arith.addf %23, %25 : vector<16x1xf32>
    %27 = math.absf %26 : vector<16x1xf32>
    %cst_17 = arith.constant 0.000000e+00 : f32
    %28 = vector.broadcast %cst_17 : f32 to vector<16x1xf32>
    %29 = arith.subf %28, %27 : vector<16x1xf32>
    %30 = math.exp %29 : vector<16x1xf32>
    %cst_18 = arith.constant 0.000000e+00 : f32
    %31 = vector.broadcast %cst_18 : f32 to vector<16x1xf32>
    %32 = arith.cmpf oge, %26, %31 : vector<16x1xf32>
    %cst_19 = arith.constant 1.000000e+00 : f32
    %33 = vector.broadcast %cst_19 : f32 to vector<16x1xf32>
    %34 = arith.addf %33, %30 : vector<16x1xf32>
    %cst_20 = arith.constant 1.000000e+00 : f32
    %35 = vector.broadcast %cst_20 : f32 to vector<16x1xf32>
    %36 = arith.divf %35, %34 : vector<16x1xf32>
    %cst_21 = arith.constant 1.000000e+00 : f32
    %37 = vector.broadcast %cst_21 : f32 to vector<16x1xf32>
    %38 = arith.addf %37, %30 : vector<16x1xf32>
    %39 = arith.divf %30, %38 : vector<16x1xf32>
    %40 = arith.select %32, %36, %39 : vector<16x1xi1>, vector<16x1xf32>
    %c0_22 = arith.constant 0 : index
    %c0_23 = arith.constant 0 : index
    %41 = vector.load %arg8[%c0_22, %c0_23] : memref<16x1xf32, #tpu.memory_space<vmem>>, vector<16x1xf32>
    tpu.vector_store %arg8[%c0_22, %c0_23], %40 {strides = array<i32>} : memref<16x1xf32, #tpu.memory_space<vmem>>, vector<16x1xf32>,
    return
  }
  func.func @transform_0(%arg0: i32) -> (i32, i32) {
    %c0_i32 = arith.constant 0 : i32
    %c0_i32_0 = arith.constant 0 : i32
    return %arg0, %c0_i32 : i32, i32
  }
  func.func @transform_1(%arg0: i32) -> (i32, i32) {
    %c0_i32 = arith.constant 0 : i32
    %c0_i32_0 = arith.constant 0 : i32
    %c0_i32_1 = arith.constant 0 : i32
    return %c0_i32, %c0_i32_0 : i32, i32
  }
  func.func @transform_2(%arg0: i32) -> (i32, i32) {
    %c0_i32 = arith.constant 0 : i32
    %c0_i32_0 = arith.constant 0 : i32
    %c0_i32_1 = arith.constant 0 : i32
    return %c0_i32, %c0_i32_0 : i32, i32
  }
  func.func @transform_3(%arg0: i32) -> (i32, i32) {
    %c0_i32 = arith.constant 0 : i32
    %c0_i32_0 = arith.constant 0 : i32
    %c0_i32_1 = arith.constant 0 : i32
    return %c0_i32, %c0_i32_0 : i32, i32
  }
  func.func @transform_4(%arg0: i32) -> (i32, i32) {
    %c0_i32 = arith.constant 0 : i32
    %c0_i32_0 = arith.constant 0 : i32
    %c0_i32_1 = arith.constant 0 : i32
    return %c0_i32, %c0_i32_0 : i32, i32
  }
  func.func @transform_5(%arg0: i32) -> (i32, i32) {
    %c0_i32 = arith.constant 0 : i32
    %c0_i32_0 = arith.constant 0 : i32
    %c0_i32_1 = arith.constant 0 : i32
    return %c0_i32, %c0_i32_0 : i32, i32
  }
  func.func @transform_6(%arg0: i32) -> (i32, i32) {
    %c0_i32 = arith.constant 0 : i32
    %c0_i32_0 = arith.constant 0 : i32
    %c0_i32_1 = arith.constant 0 : i32
    return %c0_i32, %c0_i32_0 : i32, i32
  }
  func.func @transform_7(%arg0: i32) -> (i32, i32) {
    %c0_i32 = arith.constant 0 : i32
    %c0_i32_0 = arith.constant 0 : i32
    return %arg0, %c0_i32 : i32, i32
  }
}

</mosaic_0001>

<bundles_post_ra>
// kernel: tpu_custom_call.1
= control target key start
LH: loop header
LB: loop body
LE: loop exit
PB: predicated region body
PF: predicated region fallthrough
CT: control target
= control target key end

     0   :  { %s1682_s0 = inlined_call_operand.hbm [shape: f32[16,256], index: 0, kind: input, shape index: {}]   ;;  %s1683_s1 = inlined_call_operand.hbm [shape: bf16[256,512], index: 1, kind: input, shape index: {}]   ;;  %s1684_s2 = inlined_call_operand.vmem [shape: f32[1,512], index: 2, kind: input, shape index: {}]   ;;  %s1685_s3 = inlined_call_operand.hbm [shape: bf16[512,256], index: 3, kind: input, shape index: {}]   ;;  %s1686_s4 = inlined_call_operand.vmem [shape: f32[1,256], index: 4, kind: input, shape index: {}]   ;;  %s1687_s5 = inlined_call_operand.vmem [shape: f32[1,256], index: 5, kind: input, shape index: {}]   ;;  %s1688_s6 = inlined_call_operand.<no memory space> [shape: f32[1,1], index: 6, kind: input, shape index: {}]   ;;  %s1689_s7 = inlined_call_operand.vmem [shape: f32[16,1], index: 7, kind: output, shape index: {}]  }
   0x1   :  { %v12_v0 = vstv %s1688_s6 }
   0x2   :  { %13 = vst [vmem:[#allocation2] sm:$0x1] %v12_v0 }
   0x3   :  { %14 = vsyncpa [#allocation4], 0 }
   0x4   :  { %15 = vsyncpa [#allocation6], 0  ;;  %s1544_s26 = smov [#allocation5]   ;;  %s1545_s28 = smov [#allocation3]  }
   0x5   :  { %s33_s27 = sshll.u32 %s1544_s26, 4  ;;  %s21_s29 = sshll.u32 %s1545_s28, 4  ;;  %s34_s27 = int_to_ptr.vmem [resolvable:$true] %s33_s27  ;;  %s1594_s29 = int_to_ptr.vmem [resolvable:$true] %s21_s29 }
   0x6   :  { %s1474_s9 = scalar_lea.hbm %s1683_s1, 8192 }
   0x7   :  { %p1475_p0 = scmp.ne.s32.totalorder %s1683_s1, %s1474_s9  ;;  %p1478_p1 = scmp.lt.u32.totalorder %s1474_s9, %s1683_s1 }
   0x9   :  { %p1480_p2 = pnand %p1478_p1, %p1475_p0 }
   0xb   :  { %1483 = shalt.err (!%p1480_p2)
}
   0xc   :  { %s1484_s13 = scalar_lea.vmem %s34_s27, 8192  ;;  %p1489_p4 = scmp.lt.s32.totalorder %s34_s27, %s34_s27 }
   0xd   :  { %p1485_p3 = scmp.ne.s32.totalorder %s34_s27, %s1484_s13  ;;  %p1490_p5 = scmp.lt.s32.totalorder %s1484_s13, %s1484_s13 }
   0xf   :  { %p1491_p6 = por %p1490_p5, %p1489_p4 }
  0x11   :  { %p1492_p7 = pnand %p1491_p6, %p1485_p3 }
  0x13   :  { %1495 = shalt.err (!%p1492_p7)
}
  0x14   :  { %s1546_s14 = smov 256   ;;  %s1547_s15 = smov 16  }
  0x15   :  { %39 = dma.hbm_to_vmem [thread:$0]  %s1683_s1, 8192, %s34_s27, [#allocation6], %s1546_s14, %s1546_s14, %s1547_s15  }
  0x16   :  { %s1496_s20 = scalar_lea.hbm %s1682_s0, 512 }
  0x17   :  { %p1497_p8 = scmp.ne.s32.totalorder %s1682_s0, %s1496_s20  ;;  %p1500_p9 = scmp.lt.u32.totalorder %s1496_s20, %s1682_s0 }
  0x19   :  { %p1502_p10 = pnand %p1500_p9, %p1497_p8 }
  0x1b   :  { %1505 = shalt.err (!%p1502_p10)
}
  0x1c   :  { %s1506_s25 = scalar_lea.vmem %s1594_s29, 512  ;;  %p1511_p12 = scmp.lt.s32.totalorder %s1594_s29, %s1594_s29 }
  0x1d   :  { %p1507_p11 = scmp.ne.s32.totalorder %s1594_s29, %s1506_s25  ;;  %p1512_p13 = scmp.lt.s32.totalorder %s1506_s25, %s1506_s25 }
  0x1f   :  { %p1513_p0 = por %p1512_p13, %p1511_p12 }
  0x21   :  { %p1514_p1 = pnand %p1513_p0, %p1507_p11 }
  0x23   :  { %1517 = shalt.err (!%p1514_p1)
}
  0x24   :  { %27 = dma.hbm_to_vmem [thread:$0]  %s1682_s0, 512, %s1594_s29, [#allocation4], %s1546_s14, %s1546_s14, %s1547_s15  }
  0x25   :  { %s1548_s27 = smov [#allocation7]   ;;  %s1518_s9 = scalar_lea.hbm %s1685_s3, 8192 }
  0x26   :  { %s47_s28 = sshll.u32 %s1548_s27, 4  ;;  %p1519_p2 = scmp.ne.s32.totalorder %s1685_s3, %s1518_s9  ;;  %s48_s28 = int_to_ptr.vmem [resolvable:$true] %s47_s28 }
  0x27   :  { %p1522_p3 = scmp.lt.u32.totalorder %s1518_s9, %s1685_s3 }
  0x29   :  { %p1524_p4 = pnand %p1522_p3, %p1519_p2 }
  0x2b   :  { %1527 = shalt.err (!%p1524_p4)
}
  0x2c   :  { %s1528_s13 = scalar_lea.vmem %s48_s28, 8192  ;;  %p1533_p6 = scmp.lt.s32.totalorder %s48_s28, %s48_s28 }
  0x2d   :  { %p1529_p5 = scmp.ne.s32.totalorder %s48_s28, %s1528_s13  ;;  %p1534_p7 = scmp.lt.s32.totalorder %s1528_s13, %s1528_s13 }
  0x2f   :  { %p1535_p8 = por %p1534_p7, %p1533_p6 }
  0x31   :  { %p1536_p9 = pnand %p1535_p8, %p1529_p5 }
  0x33   :  { %1539 = shalt.err (!%p1536_p9)
}
  0x34   :  { %s1549_s0 = smov 128   ;;  %s1550_s29 = smov 8  }
  0x35   :  { %53 = dma.hbm_to_vmem [thread:$0]  %s1685_s3, 8192, %s48_s28, [#allocation6], %s1549_s0, %s1549_s0, %s1550_s29  }
  0x36   :  { %1540 = dma.done.wait [#allocation4], 512  }
  0x37   :  { %1541 = vsyncadd [#allocation4], 4294966784 }
  0x38   :  { %1542 = dma.done.wait [#allocation6], 16384  }
  0x39   :  { %1543 = vsyncadd [#allocation6], 4294950912  ;;  %v1274_v1 = vld [vmem:[#allocation5 + $0x4] ss:$16 sps:$4 sm:$0xff]   ;;  %v1276_v2 = vld [vmem:[#allocation5] ss:$16 sps:$4 sm:$0xff]  }
  0x3a   :  { %482 = vmatprep.subr.bf16.mxu1 %v1274_v1  ;;  %v1277_v3 = vld [vmem:[#allocation5 + $0x24] ss:$16 sps:$4 sm:$0xff]   ;;  %v1279_v4 = vld [vmem:[#allocation5 + $0x20] ss:$16 sps:$4 sm:$0xff]   ;;  %v71_v14 = vld [vmem:[#allocation3 + $0x8] sm:$0xff]  ;;  %vm1121_vm0 = vcmask 7168  }
  0x3b   :  { %483 = vmatpush1.bf16.msra.mxu1 %v1276_v2  ;;  %v1280_v5 = vld [vmem:[#allocation5 + $0x44] ss:$16 sps:$4 sm:$0xff]   ;;  %v1282_v6 = vld [vmem:[#allocation5 + $0x40] ss:$16 sps:$4 sm:$0xff]   ;;  %v73_v15 = vld [vmem:[#allocation3 + $0x18] sm:$0xff] }
  0x3c   :  { %484 = vmatprep.subr.bf16.mxu1 %v1277_v3  ;;  %v1283_v7 = vld [vmem:[#allocation5 + $0x64] ss:$16 sps:$4 sm:$0xff]   ;;  %v1285_v8 = vld [vmem:[#allocation5 + $0x60] ss:$16 sps:$4 sm:$0xff]   ;;  %v1637_v16 = vpack.c.bf16 %v73_v15, %v71_v14  ;;  %v1324_v47 = vld [vmem:[#allocation5 + $0xc] ss:$16 sps:$4 sm:$0xff]  }
  0x3d   :  { %v1286_v9 = vld [vmem:[#allocation5 + $0x84] ss:$16 sps:$4 sm:$0xff]   ;;  %v1288_v10 = vld [vmem:[#allocation5 + $0x80] ss:$16 sps:$4 sm:$0xff]   ;;  %v1322_v50 = vld [vmem:[#allocation5 + $0x8] ss:$16 sps:$4 sm:$0xff]  }
  0x3e   :  { %v1289_v11 = vld [vmem:[#allocation5 + $0xa4] ss:$16 sps:$4 sm:$0xff]   ;;  %v1291_v12 = vld [vmem:[#allocation5 + $0xa0] ss:$16 sps:$4 sm:$0xff]   ;;  %514 = vmatprep.mubr.bf16.mxu1 %v1637_v16  ;;  %v1327_v52 = vld [vmem:[#allocation5 + $0x2c] ss:$16 sps:$4 sm:$0xff]  }
  0x3f   :  { %485 = vmatpush1.bf16.msra.mxu1 %v1279_v4  ;;  %v1292_v13 = vld [vmem:[#allocation5 + $0xc4] ss:$16 sps:$4 sm:$0xff]   ;;  %v1294_v17 = vld [vmem:[#allocation5 + $0xc0] ss:$16 sps:$4 sm:$0xff]   ;;  %v1325_v55 = vld [vmem:[#allocation5 + $0x28] ss:$16 sps:$4 sm:$0xff]  }
  0x40   :  { %486 = vmatprep.subr.bf16.mxu1 %v1280_v5  ;;  %v1295_v18 = vld [vmem:[#allocation5 + $0xe4] ss:$16 sps:$4 sm:$0xff]   ;;  %v1297_v19 = vld [vmem:[#allocation5 + $0xe0] ss:$16 sps:$4 sm:$0xff]   ;;  %v1330_v56 = vld [vmem:[#allocation5 + $0x4c] ss:$16 sps:$4 sm:$0xff]  }
  0x41   :  { %v1298_v20 = vld [vmem:[#allocation5 + $0x104] ss:$16 sps:$4 sm:$0xff]   ;;  %v1300_v21 = vld [vmem:[#allocation5 + $0x100] ss:$16 sps:$4 sm:$0xff]   ;;  %v1328_v59 = vld [vmem:[#allocation5 + $0x48] ss:$16 sps:$4 sm:$0xff]  }
  0x42   :  { %v1301_v22 = vld [vmem:[#allocation5 + $0x124] ss:$16 sps:$4 sm:$0xff]   ;;  %v1303_v23 = vld [vmem:[#allocation5 + $0x120] ss:$16 sps:$4 sm:$0xff]   ;;  %v1333_v60 = vld [vmem:[#allocation5 + $0x6c] ss:$16 sps:$4 sm:$0xff]  }
  0x43   :  { %487 = vmatpush1.bf16.msra.mxu1 %v1282_v6  ;;  %v1304_v24 = vld [vmem:[#allocation5 + $0x144] ss:$16 sps:$4 sm:$0xff]   ;;  %v1306_v25 = vld [vmem:[#allocation5 + $0x140] ss:$16 sps:$4 sm:$0xff]   ;;  %v1331_v63 = vld [vmem:[#allocation5 + $0x68] ss:$16 sps:$4 sm:$0xff]  }
  0x44   :  { %488 = vmatprep.subr.bf16.mxu1 %v1283_v7  ;;  %v1307_v26 = vld [vmem:[#allocation5 + $0x164] ss:$16 sps:$4 sm:$0xff]   ;;  %v1309_v27 = vld [vmem:[#allocation5 + $0x160] ss:$16 sps:$4 sm:$0xff]   ;;  %v1336_v0 = vld [vmem:[#allocation5 + $0x8c] ss:$16 sps:$4 sm:$0xff]  }
  0x45   :  { %v1310_v28 = vld [vmem:[#allocation5 + $0x184] ss:$16 sps:$4 sm:$0xff]   ;;  %v1372_v30 = vld [vmem:[#allocation7] ss:$8 sps:$4 sm:$0xff]   ;;  %v1375_v34 = vld [vmem:[#allocation7 + $0x10] ss:$8 sps:$4 sm:$0xff]  }
  0x46   :  { %v1370_v29 = vld [vmem:[#allocation7 + $0x4] ss:$8 sps:$4 sm:$0xff]   ;;  %v1312_v31 = vld [vmem:[#allocation5 + $0x180] ss:$16 sps:$4 sm:$0xff]   ;;  %v1373_v32 = vld [vmem:[#allocation7 + $0x14] ss:$8 sps:$4 sm:$0xff]  }
  0x47   :  { %489 = vmatpush1.bf16.msra.mxu1 %v1285_v8  ;;  %976 = vmatprep.subr.bf16.mxu0 %v1370_v29  ;;  %v1313_v33 = vld [vmem:[#allocation5 + $0x1a4] ss:$16 sps:$4 sm:$0xff]   ;;  %v1315_v36 = vld [vmem:[#allocation5 + $0x1a0] ss:$16 sps:$4 sm:$0xff]   ;;  %v1334_v3 = vld [vmem:[#allocation5 + $0x88] ss:$16 sps:$4 sm:$0xff]  }
  0x48   :  { %490 = vmatprep.subr.bf16.mxu1 %v1286_v9  ;;  %977 = vmatpush1.bf16.msra.mxu0 %v1372_v30  ;;  %v1376_v35 = vld [vmem:[#allocation7 + $0x24] ss:$8 sps:$4 sm:$0xff]   ;;  %v1378_v38 = vld [vmem:[#allocation7 + $0x20] ss:$8 sps:$4 sm:$0xff]   ;;  %v1379_v39 = vld [vmem:[#allocation7 + $0x34] ss:$8 sps:$4 sm:$0xff]  }
  0x49   :  { %978 = vmatprep.subr.bf16.mxu0 %v1373_v32  ;;  %v1316_v37 = vld [vmem:[#allocation5 + $0x1c4] ss:$16 sps:$4 sm:$0xff]   ;;  %v1318_v40 = vld [vmem:[#allocation5 + $0x1c0] ss:$16 sps:$4 sm:$0xff]   ;;  %v1339_v4 = vld [vmem:[#allocation5 + $0xac] ss:$16 sps:$4 sm:$0xff]  }
  0x4a   :  { %v1319_v41 = vld [vmem:[#allocation5 + $0x1e4] ss:$16 sps:$4 sm:$0xff]   ;;  %v1381_v42 = vld [vmem:[#allocation7 + $0x30] ss:$8 sps:$4 sm:$0xff]   ;;  %v1384_v48 = vld [vmem:[#allocation7 + $0x40] ss:$8 sps:$4 sm:$0xff]  }
  0x4b   :  { %491 = vmatpush1.bf16.msra.mxu1 %v1288_v10  ;;  %v1382_v43 = vld [vmem:[#allocation7 + $0x44] ss:$8 sps:$4 sm:$0xff]   ;;  %v1321_v44 = vld [vmem:[#allocation5 + $0x1e0] ss:$16 sps:$4 sm:$0xff]   ;;  %v1385_v49 = vld [vmem:[#allocation7 + $0x54] ss:$8 sps:$4 sm:$0xff]  }
  0x4c   :  { %492 = vmatprep.subr.bf16.mxu1 %v1289_v11  ;;  %979 = vmatpush1.bf16.msra.mxu0 %v1375_v34  ;;  %v70_v45 = vld [vmem:[#allocation3] sm:$0xff]  ;;  %v72_v46 = vld [vmem:[#allocation3 + $0x10] sm:$0xff]  ;;  %v1337_v7 = vld [vmem:[#allocation5 + $0xa8] ss:$16 sps:$4 sm:$0xff]  }
  0x4d   :  { %980 = vmatprep.subr.bf16.mxu0 %v1376_v35  ;;  %v1640_v51 = vpack.c.bf16 %v72_v46, %v70_v45  ;;  %v1387_v53 = vld [vmem:[#allocation7 + $0x50] ss:$8 sps:$4 sm:$0xff]   ;;  %v1388_v54 = vld [vmem:[#allocation7 + $0x64] ss:$8 sps:$4 sm:$0xff]   ;;  %v1390_v57 = vld [vmem:[#allocation7 + $0x60] ss:$8 sps:$4 sm:$0xff]  }
  0x4e   :  { %v1391_v58 = vld [vmem:[#allocation7 + $0x74] ss:$8 sps:$4 sm:$0xff]   ;;  %v1393_v61 = vld [vmem:[#allocation7 + $0x70] ss:$8 sps:$4 sm:$0xff]   ;;  %v1394_v62 = vld [vmem:[#allocation7 + $0x84] ss:$8 sps:$4 sm:$0xff]  }
  0x4f   :  { %493 = vmatpush1.bf16.msra.mxu1 %v1291_v12  ;;  %v1396_v1 = vld [vmem:[#allocation7 + $0x80] ss:$8 sps:$4 sm:$0xff]   ;;  %v1397_v2 = vld [vmem:[#allocation7 + $0x94] ss:$8 sps:$4 sm:$0xff]   ;;  %v1399_v5 = vld [vmem:[#allocation7 + $0x90] ss:$8 sps:$4 sm:$0xff]  }
  0x50   :  { %494 = vmatprep.subr.bf16.mxu1 %v1292_v13  ;;  %981 = vmatpush1.bf16.msra.mxu0 %v1378_v38  ;;  %v1400_v6 = vld [vmem:[#allocation7 + $0xa4] ss:$8 sps:$4 sm:$0xff]   ;;  %v1402_v9 = vld [vmem:[#allocation7 + $0xa0] ss:$8 sps:$4 sm:$0xff]   ;;  %v1403_v10 = vld [vmem:[#allocation7 + $0xb4] ss:$8 sps:$4 sm:$0xff]  }
  0x51   :  { %982 = vmatprep.subr.bf16.mxu0 %v1379_v39  ;;  %v1342_v8 = vld [vmem:[#allocation5 + $0xcc] ss:$16 sps:$4 sm:$0xff]   ;;  %v1340_v11 = vld [vmem:[#allocation5 + $0xc8] ss:$16 sps:$4 sm:$0xff]  }
  0x52   :  { %v1345_v12 = vld [vmem:[#allocation5 + $0xec] ss:$16 sps:$4 sm:$0xff]   ;;  %v1405_v13 = vld [vmem:[#allocation7 + $0xb0] ss:$8 sps:$4 sm:$0xff]  }
  0x53   :  { %495 = vmatpush1.bf16.msra.mxu1 %v1294_v17  ;;  %v1406_v14 = vld [vmem:[#allocation7 + $0xc4] ss:$8 sps:$4 sm:$0xff]   ;;  %v1343_v15 = vld [vmem:[#allocation5 + $0xe8] ss:$16 sps:$4 sm:$0xff]  }
  0x54   :  { %496 = vmatprep.subr.bf16.mxu1 %v1295_v18  ;;  %983 = vmatpush1.bf16.msra.mxu0 %v1381_v42  ;;  %v1408_v17 = vld [vmem:[#allocation7 + $0xc0] ss:$8 sps:$4 sm:$0xff]   ;;  %v1366_v29 = vld [vmem:[#allocation5 + $0x1cc] ss:$16 sps:$4 sm:$0xff]   ;;  %v1411_v34 = vld [vmem:[#allocation7 + $0xd0] ss:$8 sps:$4 sm:$0xff]  }
  0x55   :  { %984 = vmatprep.subr.bf16.mxu0 %v1382_v43  ;;  %v1346_v18 = vld [vmem:[#allocation5 + $0x108] ss:$16 sps:$4 sm:$0xff]   ;;  %v1412_v35 = vld [vmem:[#allocation7 + $0xe4] ss:$8 sps:$4 sm:$0xff]   ;;  %v1653_v43 = vld [vmem:[%s1684_s2] sm:$0xf] }
  0x56   :  { %v1364_v30 = vld [vmem:[#allocation5 + $0x1c8] ss:$16 sps:$4 sm:$0xff]   ;;  %v1420_v39 = vld [vmem:[#allocation7 + $0x104] ss:$8 sps:$4 sm:$0xff]  }
  0x57   :  { %497 = vmatpush1.bf16.msra.mxu1 %v1297_v19  ;;  %v1351_v19 = vld [vmem:[#allocation5 + $0x12c] ss:$16 sps:$4 sm:$0xff]   ;;  %v1367_v32 = vld [vmem:[#allocation5 + $0x1e8] ss:$16 sps:$4 sm:$0xff]  }
  0x58   :  { %498 = vmatprep.subr.bf16.mxu1 %v1298_v20  ;;  %985 = vmatpush1.bf16.msra.mxu0 %v1384_v48  ;;  %v1349_v20 = vld [vmem:[#allocation5 + $0x128] ss:$16 sps:$4 sm:$0xff]  }
  0x59   :  { %986 = vmatprep.subr.bf16.mxu0 %v1385_v49  ;;  %v1417_v38 = vld [vmem:[#allocation7 + $0xf0] ss:$8 sps:$4 sm:$0xff]  }
  0x5b   :  { %499 = vmatpush1.bf16.msra.mxu1 %v1300_v21  ;;  %v1354_v21 = vld [vmem:[#allocation5 + $0x14c] ss:$16 sps:$4 sm:$0xff]  }
  0x5c   :  { %500 = vmatprep.subr.bf16.mxu1 %v1301_v22  ;;  %987 = vmatpush1.bf16.msra.mxu0 %v1387_v53  ;;  %v1352_v22 = vld [vmem:[#allocation5 + $0x148] ss:$16 sps:$4 sm:$0xff]  }
  0x5d   :  { %988 = vmatprep.subr.bf16.mxu0 %v1388_v54 }
  0x5f   :  { %501 = vmatpush1.bf16.msra.mxu1 %v1303_v23  ;;  %v1357_v23 = vld [vmem:[#allocation5 + $0x16c] ss:$16 sps:$4 sm:$0xff]  }
  0x60   :  { %502 = vmatprep.subr.bf16.mxu1 %v1304_v24  ;;  %989 = vmatpush1.bf16.msra.mxu0 %v1390_v57  ;;  %v1355_v24 = vld [vmem:[#allocation5 + $0x168] ss:$16 sps:$4 sm:$0xff]  }
  0x61   :  { %990 = vmatprep.subr.bf16.mxu0 %v1391_v58 }
  0x63   :  { %503 = vmatpush1.bf16.msra.mxu1 %v1306_v25  ;;  %v1360_v25 = vld [vmem:[#allocation5 + $0x18c] ss:$16 sps:$4 sm:$0xff]  }
  0x64   :  { %504 = vmatprep.subr.bf16.mxu1 %v1307_v26  ;;  %991 = vmatpush1.bf16.msra.mxu0 %v1393_v61  ;;  %v1358_v26 = vld [vmem:[#allocation5 + $0x188] ss:$16 sps:$4 sm:$0xff]  }
  0x65   :  { %992 = vmatprep.subr.bf16.mxu0 %v1394_v62  ;;  %v1423_v62 = vld [vmem:[#allocation7 + $0x114] ss:$8 sps:$4 sm:$0xff]  }
  0x67   :  { %505 = vmatpush1.bf16.msra.mxu1 %v1309_v27  ;;  %v1363_v27 = vld [vmem:[#allocation5 + $0x1ac] ss:$16 sps:$4 sm:$0xff]  }
  0x68   :  { %506 = vmatprep.subr.bf16.mxu1 %v1310_v28  ;;  %993 = vmatpush1.bf16.msra.mxu0 %v1396_v1  ;;  %v1361_v28 = vld [vmem:[#allocation5 + $0x1a8] ss:$16 sps:$4 sm:$0xff]  }
  0x69   :  { %994 = vmatprep.subr.bf16.mxu0 %v1397_v2  ;;  %v1424_v1 = vld [vmem:[#allocation7 + $0x120] ss:$8 sps:$4 sm:$0xff]   ;;  %v1429_v2 = vld [vmem:[#allocation7 + $0x134] ss:$8 sps:$4 sm:$0xff]  }
  0x6b   :  { %507 = vmatpush1.bf16.msra.mxu1 %v1312_v31  ;;  %v1369_v31 = vld [vmem:[#allocation5 + $0x1ec] ss:$16 sps:$4 sm:$0xff]  }
  0x6c   :  { %508 = vmatprep.subr.bf16.mxu1 %v1313_v33  ;;  %995 = vmatpush1.bf16.msra.mxu0 %v1399_v5  ;;  %v1409_v33 = vld [vmem:[#allocation7 + $0xd4] ss:$8 sps:$4 sm:$0xff]   ;;  %v1430_v5 = vld [vmem:[#allocation7 + $0x140] ss:$8 sps:$4 sm:$0xff]  }
  0x6d   :  { %996 = vmatprep.subr.bf16.mxu0 %v1400_v6  ;;  %v1435_v6 = vld [vmem:[#allocation7 + $0x154] ss:$8 sps:$4 sm:$0xff]  }
  0x6f   :  { %509 = vmatpush1.bf16.msra.mxu1 %v1315_v36  ;;  %v1414_v36 = vld [vmem:[#allocation7 + $0xe0] ss:$8 sps:$4 sm:$0xff]  }
  0x70   :  { %510 = vmatprep.subr.bf16.mxu1 %v1316_v37  ;;  %997 = vmatpush1.bf16.msra.mxu0 %v1402_v9  ;;  %v1415_v37 = vld [vmem:[#allocation7 + $0xf4] ss:$8 sps:$4 sm:$0xff]   ;;  %v1436_v9 = vld [vmem:[#allocation7 + $0x160] ss:$8 sps:$4 sm:$0xff]  }
  0x71   :  { %998 = vmatprep.subr.bf16.mxu0 %v1403_v10  ;;  %v1441_v10 = vld [vmem:[#allocation7 + $0x174] ss:$8 sps:$4 sm:$0xff]  }
  0x73   :  { %511 = vmatpush1.bf16.msra.mxu1 %v1318_v40  ;;  %v142_v40 = vlaneseq }
  0x74   :  { %512 = vmatprep.subr.bf16.mxu1 %v1319_v41  ;;  %999 = vmatpush1.bf16.msra.mxu0 %v1405_v13  ;;  %v1442_v13 = vld [vmem:[#allocation7 + $0x180] ss:$8 sps:$4 sm:$0xff]  }
  0x75   :  { %1000 = vmatprep.subr.bf16.mxu0 %v1406_v14  ;;  %v1645_v41 = vshrl.u32 %v142_v40, 7  ;;  %v1447_v14 = vld [vmem:[#allocation7 + $0x194] ss:$8 sps:$4 sm:$0xff]  }
  0x77   :  { %513 = vmatpush1.bf16.msra.mxu1 %v1321_v44  ;;  %v1648_v42 = vsub.s32 0, %v1645_v41  ;;  %v1656_v44 = vsub.s32 1, %v1645_v41 }
  0x78   :  { %525 = vmatprep.subr.bf16.mxu1 %v1324_v47  ;;  %1001 = vmatpush1.bf16.msra.mxu0 %v1408_v17  ;;  %v1448_v17 = vld [vmem:[#allocation7 + $0x1a0] ss:$8 sps:$4 sm:$0xff]  }
  0x79   :  { %1002 = vmatprep.subr.bf16.mxu0 %v1409_v33  ;;  %v145_v45 = vrot.slane %v1653_v43, %v1648_v42  ;;  %v149_v47 = vrot.slane %v1653_v43, %v1656_v44 }
  0x7a   :  { %515 = vmatmul.mubr.bf16.vlgmr.msra.gmra.mrb[0].mxu1 %v1640_v51 }
  0x7b   :  { %526 = vmatpush1.bf16.msra.mxu1 %v1322_v50  ;;  %557 = vmatprep.mubr.bf16.mxu1 %v1637_v16  ;;  %v1348_v16 = vld [vmem:[#allocation5 + $0x10c] ss:$16 sps:$4 sm:$0xff]  }
  0x7c   :  { %527 = vmatprep.subr.bf16.mxu1 %v1327_v52  ;;  %1003 = vmatpush1.bf16.msra.mxu0 %v1411_v34 }
  0x7d   :  { %1004 = vmatprep.subr.bf16.mxu0 %v1412_v35 }
  0x7f   :  { %528 = vmatpush1.bf16.msra.mxu1 %v1325_v55 }
  0x80   :  { %529 = vmatprep.subr.bf16.mxu1 %v1330_v56  ;;  %1005 = vmatpush1.bf16.msra.mxu0 %v1414_v36  ;;  %v1465_v36 = vld [vmem:[#allocation7 + $0x1f4] ss:$8 sps:$4 sm:$0xff]  }
  0x81   :  { %1006 = vmatprep.subr.bf16.mxu0 %v1415_v37 }
  0x83   :  { %530 = vmatpush1.bf16.msra.mxu1 %v1328_v59 }
  0x84   :  { %531 = vmatprep.subr.bf16.mxu1 %v1333_v60  ;;  %1007 = vmatpush1.bf16.msra.mxu0 %v1417_v38  ;;  %v1418_v60 = vld [vmem:[#allocation7 + $0x100] ss:$8 sps:$4 sm:$0xff]  }
  0x85   :  { %1019 = vmatprep.subr.bf16.mxu0 %v1420_v39 }
  0x87   :  { %532 = vmatpush1.bf16.msra.mxu1 %v1331_v63  ;;  %v1421_v63 = vld [vmem:[#allocation7 + $0x110] ss:$8 sps:$4 sm:$0xff]  }
  0x88   :  { %533 = vmatprep.subr.bf16.mxu1 %v1336_v0  ;;  %v1426_v0 = vld [vmem:[#allocation7 + $0x124] ss:$8 sps:$4 sm:$0xff]  }
  0x8b   :  { %534 = vmatpush1.bf16.msra.mxu1 %v1334_v3  ;;  %v1427_v3 = vld [vmem:[#allocation7 + $0x130] ss:$8 sps:$4 sm:$0xff]  }
  0x8c   :  { %535 = vmatprep.subr.bf16.mxu1 %v1339_v4  ;;  %v1432_v4 = vld [vmem:[#allocation7 + $0x144] ss:$8 sps:$4 sm:$0xff]  }
  0x8f   :  { %536 = vmatpush1.bf16.msra.mxu1 %v1337_v7  ;;  %v1433_v7 = vld [vmem:[#allocation7 + $0x150] ss:$8 sps:$4 sm:$0xff]  }
  0x90   :  { %537 = vmatprep.subr.bf16.mxu1 %v1342_v8  ;;  %v1438_v8 = vld [vmem:[#allocation7 + $0x164] ss:$8 sps:$4 sm:$0xff]  }
  0x93   :  { %538 = vmatpush1.bf16.msra.mxu1 %v1340_v11  ;;  %v1439_v11 = vld [vmem:[#allocation7 + $0x170] ss:$8 sps:$4 sm:$0xff]  }
  0x94   :  { %539 = vmatprep.subr.bf16.mxu1 %v1345_v12  ;;  %v1444_v12 = vld [vmem:[#allocation7 + $0x184] ss:$8 sps:$4 sm:$0xff]  }
  0x97   :  { %540 = vmatpush1.bf16.msra.mxu1 %v1343_v15  ;;  %v1445_v15 = vld [vmem:[#allocation7 + $0x190] ss:$8 sps:$4 sm:$0xff]  }
  0x98   :  { %541 = vmatprep.subr.bf16.mxu1 %v1348_v16  ;;  %v1450_v16 = vld [vmem:[#allocation7 + $0x1a4] ss:$8 sps:$4 sm:$0xff]  }
  0x9b   :  { %542 = vmatpush1.bf16.msra.mxu1 %v1346_v18  ;;  %v1453_v18 = vld [vmem:[#allocation7 + $0x1b4] ss:$8 sps:$4 sm:$0xff]  }
  0x9c   :  { %543 = vmatprep.subr.bf16.mxu1 %v1351_v19  ;;  %v1451_v19 = vld [vmem:[#allocation7 + $0x1b0] ss:$8 sps:$4 sm:$0xff]  }
  0x9f   :  { %544 = vmatpush1.bf16.msra.mxu1 %v1349_v20  ;;  %v1456_v20 = vld [vmem:[#allocation7 + $0x1c4] ss:$8 sps:$4 sm:$0xff]  }
  0xa0   :  { %545 = vmatprep.subr.bf16.mxu1 %v1354_v21  ;;  %v1454_v21 = vld [vmem:[#allocation7 + $0x1c0] ss:$8 sps:$4 sm:$0xff]  }
  0xa3   :  { %546 = vmatpush1.bf16.msra.mxu1 %v1352_v22  ;;  %v152_v22 = vsub.s32 2, %v1645_v41 }
  0xa4   :  { %547 = vmatprep.subr.bf16.mxu1 %v1357_v23  ;;  %v1459_v23 = vld [vmem:[#allocation7 + $0x1d4] ss:$8 sps:$4 sm:$0xff]  }
  0xa7   :  { %548 = vmatpush1.bf16.msra.mxu1 %v1355_v24  ;;  %v156_v24 = vsub.s32 3, %v1645_v41  ;;  %v1463_v41 = vld [vmem:[#allocation7 + $0x1f0] ss:$8 sps:$4 sm:$0xff]  }
  0xa8   :  { %549 = vmatprep.subr.bf16.mxu1 %v1360_v25  ;;  %v1457_v25 = vld [vmem:[#allocation7 + $0x1d0] ss:$8 sps:$4 sm:$0xff]  }
  0xab   :  { %550 = vmatpush1.bf16.msra.mxu1 %v1358_v26  ;;  %v153_v26 = vrot.slane %v1653_v43, %v152_v22 }
  0xac   :  { %551 = vmatprep.subr.bf16.mxu1 %v1363_v27  ;;  %v1462_v27 = vld [vmem:[#allocation7 + $0x1e4] ss:$8 sps:$4 sm:$0xff]  }
  0xaf   :  { %552 = vmatpush1.bf16.msra.mxu1 %v1361_v28 }
  0xb0   :  { %553 = vmatprep.subr.bf16.mxu1 %v1366_v29  ;;  %v157_v29 = vrot.slane %v1653_v43, %v156_v24 }
  0xb3   :  { %554 = vmatpush1.bf16.msra.mxu1 %v1364_v30 }
  0xb4   :  { %555 = vmatprep.subr.bf16.mxu1 %v1369_v31 }
  0xb7   :  { %556 = vmatpush1.bf16.msra.mxu1 %v1367_v32  ;;  %v1460_v32 = vld [vmem:[#allocation7 + $0x1e0] ss:$8 sps:$4 sm:$0xff]  }
  0xba   :  { %558 = vmatmul.mubr.bf16.vlgmr.msra.gmra.mrb[4].mxu1 %v1640_v51 }
 0x14d   :  { %v516_v46 = vpop.f32.mrb[0].mxu1 }
 0x14e   :  { %v517_v48 = vadd.f32 %v516_v46, %v145_v45  ;;  %v518_v49 = vpop.f32.mrb[1].mxu1 }
 0x14f   :  { %v520_v50 = vpop.f32.mrb[2].mxu1  ;;  %v519_v53 = vadd.f32 %v518_v49, %v149_v47 }
 0x150   :  { %v521_v51 = vadd.f32 %v520_v50, %v145_v45  ;;  %v522_v52 = vpop.f32.mrb[3].mxu1 }
 0x151   :  { %v523_v54 = vadd.f32 %v522_v52, %v149_v47  ;;  %v1070_v52 = vld [vmem:[%s1687_s5] sm:$0x3] }
 0x152   :  { %v568_v55 = vpack.c.bf16 %v521_v51, %v517_v48  ;;  %v644_v48 = vld [vmem:[%s1686_s4] sm:$0x3] }
 0x153   :  { %v569_v56 = vpack.c.bf16 %v523_v54, %v519_v53  ;;  %v649_v49 = vrot.slane %v644_v48, %v1648_v42  ;;  %v653_v50 = vrot.slane %v644_v48, %v1656_v44 }
 0x154   :  { %v572_v57 = vmul.bf16 1045249613, %v568_v55 }
 0x155   :  { %v573_v58 = vmul.bf16 1045249613, %v569_v56 }
 0x156   :  { %v576_v61 = vmax.bf16 %v572_v57, %v568_v55 }
 0x157   :  { %v577_v59 = vmax.bf16 %v573_v58, %v569_v56 }
 0x159   :  { %1008 = vmatprep.mubr.bf16.mxu0 %v577_v59 }
 0x15a   :  { %1009 = vmatmul.mubr.bf16.vlgmr.msra.gmra.mrb[0].mxu0 %v576_v61 }
 0x15b   :  { %1020 = vmatpush1.bf16.msra.mxu0 %v1418_v60  ;;  %v1075_v60 = vrot.slane %v1070_v52, %v1648_v42 }
 0x15c   :  { %1021 = vmatprep.subr.bf16.mxu0 %v1423_v62 }
 0x15f   :  { %1022 = vmatpush1.bf16.msra.mxu0 %v1421_v63  ;;  %v1079_v63 = vrot.slane %v1070_v52, %v1656_v44 }
 0x160   :  { %1023 = vmatprep.subr.bf16.mxu0 %v1426_v0 }
 0x163   :  { %1024 = vmatpush1.bf16.msra.mxu0 %v1424_v1 }
 0x164   :  { %1025 = vmatprep.subr.bf16.mxu0 %v1429_v2 }
 0x167   :  { %1026 = vmatpush1.bf16.msra.mxu0 %v1427_v3 }
 0x168   :  { %1027 = vmatprep.subr.bf16.mxu0 %v1432_v4 }
 0x16b   :  { %1028 = vmatpush1.bf16.msra.mxu0 %v1430_v5 }
 0x16c   :  { %1029 = vmatprep.subr.bf16.mxu0 %v1435_v6 }
 0x16f   :  { %1030 = vmatpush1.bf16.msra.mxu0 %v1433_v7 }
 0x170   :  { %1031 = vmatprep.subr.bf16.mxu0 %v1438_v8 }
 0x173   :  { %1032 = vmatpush1.bf16.msra.mxu0 %v1436_v9 }
 0x174   :  { %1033 = vmatprep.subr.bf16.mxu0 %v1441_v10 }
 0x177   :  { %1034 = vmatpush1.bf16.msra.mxu0 %v1439_v11 }
 0x178   :  { %1035 = vmatprep.subr.bf16.mxu0 %v1444_v12  ;;  %v1258_v12 = vld [vmem:[#allocation2] ss:$0 sm:$0xff] }
 0x17b   :  { %1036 = vmatpush1.bf16.msra.mxu0 %v1442_v13 }
 0x17c   :  { %1037 = vmatprep.subr.bf16.mxu0 %v1447_v14 }
 0x17f   :  { %1038 = vmatpush1.bf16.msra.mxu0 %v1445_v15 }
 0x180   :  { %1039 = vmatprep.subr.bf16.mxu0 %v1450_v16 }
 0x183   :  { %1040 = vmatpush1.bf16.msra.mxu0 %v1448_v17 }
 0x184   :  { %1041 = vmatprep.subr.bf16.mxu0 %v1453_v18 }
 0x187   :  { %1042 = vmatpush1.bf16.msra.mxu0 %v1451_v19 }
 0x188   :  { %1043 = vmatprep.subr.bf16.mxu0 %v1456_v20 }
 0x18b   :  { %1044 = vmatpush1.bf16.msra.mxu0 %v1454_v21 }
 0x18c   :  { %1045 = vmatprep.subr.bf16.mxu0 %v1459_v23 }
 0x18d   :  { %v559_v28 = vpop.f32.mrb[4].mxu1 }
 0x18e   :  { %v561_v30 = vpop.f32.mrb[5].mxu1  ;;  %v560_v33 = vadd.f32 %v559_v28, %v153_v26 }
 0x18f   :  { %v563_v31 = vpop.f32.mrb[6].mxu1  ;;  %1046 = vmatpush1.bf16.msra.mxu0 %v1457_v25  ;;  %v562_v37 = vadd.f32 %v561_v30, %v157_v29 }
 0x190   :  { %v564_v34 = vadd.f32 %v563_v31, %v153_v26  ;;  %v565_v35 = vpop.f32.mrb[7].mxu1  ;;  %1047 = vmatprep.subr.bf16.mxu0 %v1462_v27 }
 0x191   :  { %v566_v38 = vadd.f32 %v565_v35, %v157_v29 }
 0x192   :  { %v570_v39 = vpack.c.bf16 %v564_v34, %v560_v33 }
 0x193   :  { %v571_v40 = vpack.c.bf16 %v566_v38, %v562_v37  ;;  %1048 = vmatpush1.bf16.msra.mxu0 %v1460_v32 }
 0x194   :  { %v574_v45 = vmul.bf16 1045249613, %v570_v39  ;;  %1049 = vmatprep.subr.bf16.mxu0 %v1465_v36 }
 0x195   :  { %v575_v46 = vmul.bf16 1045249613, %v571_v40 }
 0x196   :  { %v578_v47 = vmax.bf16 %v574_v45, %v570_v39 }
 0x197   :  { %1050 = vmatpush1.bf16.msra.mxu0 %v1463_v41  ;;  %v579_v43 = vmax.bf16 %v575_v46, %v571_v40 }
 0x199   :  { %1051 = vmatprep.mubr.bf16.mxu0 %v579_v43 }
 0x19a   :  { %1052 = vmatmul.mubr.bf16.vlgmr.msra.gmra.mrb[0].mxu0 %v578_v47 }
 0x26d   :  { %v1053_v51 = vpop.f32.mrb[0].mxu0 }
 0x26e   :  { %v1259_v53 = vadd.f32 %v1053_v51, %v649_v49  ;;  %v1055_v54 = vpop.f32.mrb[1].mxu0 }
 0x26f   :  { %v1260_v55 = vadd.f32 %v1055_v54, %v653_v50  ;;  %v1057_v56 = vpop.f32.mrb[2].mxu0 }
 0x270   :  { %v1062_v57 = vmul.f32 0.2, %v1259_v53  ;;  %v1261_v58 = vadd.f32 %v1057_v56, %v649_v49  ;;  %v1059_v59 = vpop.f32.mrb[3].mxu0 }
 0x271   :  { %v1063_v61 = vmul.f32 0.2, %v1260_v55  ;;  %v1262_v62 = vadd.f32 %v1059_v59, %v653_v50 }
 0x272   :  { %v1066_v0 = vmax.f32 %v1259_v53, %v1062_v57  ;;  %v1064_v1 = vmul.f32 0.2, %v1261_v58 }
 0x273   :  { %v1067_v2 = vmax.f32 %v1260_v55, %v1063_v61  ;;  %v1065_v3 = vmul.f32 0.2, %v1262_v62 }
 0x274   :  { %v1068_v4 = vmax.f32 %v1261_v58, %v1064_v1  ;;  %v1082_v5 = vmul.f32 %v1075_v60, %v1066_v0 }
 0x275   :  { %v1069_v6 = vmax.f32 %v1262_v62, %v1065_v3  ;;  %v1083_v7 = vmul.f32 %v1079_v63, %v1067_v2 }
 0x276   :  { %v1084_v8 = vmul.f32 %v1075_v60, %v1068_v4 }
 0x277   :  { %v1086_v9 = vadd.f32 %v1083_v7, %v1082_v5  ;;  %v1085_v10 = vmul.f32 %v1079_v63, %v1069_v6 }
 0x279   :  { %1087 = vadd.xlane.f32.xlu0 %v1086_v9  ;;  %v1089_v11 = vadd.f32 %v1085_v10, %v1084_v8 }
 0x27d   :  { %1090 = vadd.xlane.f32.xlu0 %v1089_v11 }
 0x306   :  { %v1088_v42 = vpop.xlane.xlu0 %1087 }
 0x307   :  { %v1099_v13 = vadd.f32 %v1258_v12, %v1088_v42 }
 0x309   :  { %v1101_v14 = vand.u32 2147483647, %v1099_v13  ;;  %vm1109_vm1 = vcmp.ge.f32.partialorder %v1099_v13, 0.0 }
 0x30a   :  { %v1091_v15 = vpop.xlane.xlu0 %1090 }
 0x30b   :  { %v1103_v44 = vsub.f32 0.0, %v1101_v14  ;;  %v1100_v16 = vadd.f32 %v1258_v12, %v1091_v15 }
 0x30d   :  { %v1105_v17 = vmul.f32 1.442695, %v1103_v44  ;;  %v1102_v18 = vand.u32 2147483647, %v1100_v16  ;;  %vm1110_vm2 = vcmp.ge.f32.partialorder %v1100_v16, 0.0 }
 0x30f   :  { %1466 = vpow2.f32 %v1105_v17  ;;  %v1104_v19 = vsub.f32 0.0, %v1102_v18 }
 0x311   :  { %v1107_v20 = vmul.f32 1.442695, %v1104_v19 }
 0x313   :  { %1468 = vpow2.f32 %v1107_v20 }
 0x319   :  { %v1467_v21 = vpop.eup %1466 }
 0x31a   :  { %v1111_v22 = vadd.f32 1.0, %v1467_v21 }
 0x31c   :  { %1470 = vrcp.f32 %v1111_v22 }
 0x31d   :  { %v1469_v23 = vpop.eup %1468 }
 0x31e   :  { %v1112_v24 = vadd.f32 1.0, %v1469_v23 }
 0x320   :  { %1472 = vrcp.f32 %v1112_v24 }
 0x326   :  { %v1471_v25 = vpop.eup %1470 }
 0x327   :  { %v1117_v26 = vmul.f32 %v1471_v25, %v1467_v21 }
 0x329   :  { %v1119_v27 = vsel %vm1109_vm1, %v1471_v25, %v1117_v26 }
 0x32a   :  { %v1473_v28 = vpop.eup %1472  ;;  %1122 = vst.msk [vmem:[%s1689_s7] sm:$0xff] %vm1121_vm0, %v1119_v27 }
 0x32b   :  { %v1118_v29 = vmul.f32 %v1473_v28, %v1469_v23 }
 0x32d   :  { %v1120_v30 = vsel %vm1110_vm2, %v1473_v28, %v1118_v29 }
 0x32e   :  { %1123 = vst.msk [vmem:[%s1689_s7 + $0x8] sm:$0xff] %vm1121_vm0, %v1120_v30 }
 0x32f   :  { %1128 = vsyncpa [#allocation4], 1 }
 0x330   :  { %1129 = vsyncpa [#allocation6], 1 }

</bundles_post_ra>
